<compile_context>
chip_gen: v5e
topology: v5e:2x2
jax: 0.10.0
libtpu: 0.0.40
codegen_flags: <defaults>
</compile_context>

<pallas_src>
import jax
import jax.numpy as jnp
from jax.experimental import pallas as pl
from jax.experimental.pallas import tpu as pltpu


def _binarizer_kernel(w_ref, x_ref, o_ref):
    # w_ref: (bits, C)   resident weight (same block for every grid point)
    # x_ref: (C, t_hw)   one spatial tile of one image, NCHW layout (no transpose)
    # o_ref: (bits, t_hw)
    acc = jnp.dot(w_ref[...], x_ref[...], preferred_element_type=jnp.float32)
    # torch.sign semantics (-1 / 0 / +1); sign(tanh(z)) == sign(z).
    sgn = jnp.where(acc > 0, 1.0, jnp.where(acc < 0, -1.0, 0.0))
    o_ref[...] = sgn.astype(o_ref.dtype)


def _pick_hw_tile(hw, desired=1024):
    """Lane-dense spatial tile: full extent if small, else a multiple of 128."""
    if hw <= desired:
        return hw          # block dim == full array dim: always legal
    return desired          # multiple of 128 -> unmasked, lane-dense stores


def binarizer_forward(x_nchw, conv_weight, init_conv, *, hw_tile=1024):
    """x_nchw: (N, 512, H, W); conv_weight, init_conv: (bits, 512, 1, 1)."""
    N, C, H, W = x_nchw.shape
    bits = conv_weight.shape[0]
    assert conv_weight.shape[1] == C, "weight C_in must match input channels"

    HW = H * W
    t_hw = _pick_hw_tile(HW, hw_tile)

    # Glue: free metadata ops only (no transpose, no HBM copy).
    w = (conv_weight + init_conv).reshape(bits, C)   # (bits, C_in)
    x3d = x_nchw.reshape(N, C, HW)                   # contiguous NCHW view

    grid = (N, pl.cdiv(HW, t_hw))

    out3d = pl.pallas_call(
        _binarizer_kernel,
        out_shape=jax.ShapeDtypeStruct((N, bits, HW), x_nchw.dtype),
        grid_spec=pltpu.PrefetchScalarGridSpec(
            num_scalar_prefetch=0,
            grid=grid,
            in_specs=[
                pl.BlockSpec((bits, C), lambda n, j: (0, 0)),           # weight
                pl.BlockSpec((None, C, t_hw), lambda n, j: (n, 0, j)),  # x tile
            ],
            out_specs=pl.BlockSpec((None, bits, t_hw), lambda n, j: (n, 0, j)),
        ),
        compiler_params=pltpu.CompilerParams(
            dimension_semantics=("parallel", "parallel")),
    )(w, x3d)

    # Back to NCHW: (N, bits, H, W) -- a free reshape, no transpose needed.
    return out3d.reshape(N, bits, H, W)


if __name__ == "__main__":
    key = jax.random.PRNGKey(0)
    k_x, k_w, k_i = jax.random.split(key, 3)

    N, C, H, W = 2, 512, 8, 8   # C fixed at 512 by the module
    bits = 32

    x = jax.random.normal(k_x, (N, C, H, W), dtype=jnp.float32)
    # Deterministic synthetic parameters (conv has bias=False).
    conv_weight = 0.05 * jax.random.normal(k_w, (bits, C, 1, 1), dtype=jnp.float32)
    init_conv = 0.05 * jax.random.normal(k_i, (bits, C, 1, 1), dtype=jnp.float32)

    out = binarizer_forward(x, conv_weight, init_conv)
    jax.block_until_ready(out)

    assert out.shape == (N, bits, H, W), out.shape
    # sanity: outputs are in {-1, 0, +1}
    assert bool(jnp.all(jnp.abs(out) <= 1.0))

    # Reference: sign(tanh(conv1x1(x, w_sum))).  Tolerate a tiny mismatch
    # fraction from MXU-vs-XLA rounding of near-zero dot products.
    w_full = (conv_weight + init_conv).reshape(bits, C)
    ref = jnp.sign(jnp.tanh(
        jnp.einsum("nchw,oc->nohw", x, w_full,
                   preferred_element_type=jnp.float32)))
    mismatch = float(jnp.mean((out != ref).astype(jnp.float32)))
    assert mismatch < 1e-2, f"mismatch fraction {mismatch}"

    print("KERNEL_OK")
</pallas_src>

<mosaic_0001>
module attributes {stable_mosaic.version = 11 : i64} {
  func.func @_binarizer_kernel(%arg0: i32, %arg1: i32, %arg2: memref<32x512xf32, #tpu.memory_space<vmem>>, %arg3: memref<1x512x64xf32, #tpu.memory_space<vmem>>, %arg4: memref<1x32x64xf32, #tpu.memory_space<vmem>>) attributes {dimension_semantics = [#tpu.dimension_semantics<parallel>, #tpu.dimension_semantics<parallel>], iteration_bounds = array<i64: 2, 1>, scalar_prefetch = 0 : i64, scratch_operands = 0 : i64, tpu.core_type = #tpu.core_type<tc>, window_params = [{pipeline_mode = #tpu.pipeline_mode<synchronous>, transform_indices = @transform_0, window_bounds = array<i64: 32, 512>}, {transform_indices = @transform_1, window_bounds = array<i64: 1, 512, 64>}, {transform_indices = @transform_2, window_bounds = array<i64: 1, 32, 64>}]} {
    %c0 = arith.constant 0 : index
    %c0_0 = arith.constant 0 : index
    %0 = vector.load %arg2[%c0, %c0_0] : memref<32x512xf32, #tpu.memory_space<vmem>>, vector<32x512xf32>
    %c0_1 = arith.constant 0 : index
    %c0_2 = arith.constant 0 : index
    %c0_3 = arith.constant 0 : index
    %1 = vector.load %arg3[%c0_1, %c0_2, %c0_3] : memref<1x512x64xf32, #tpu.memory_space<vmem>>, vector<1x512x64xf32>
    %2 = vector.shape_cast %1 : vector<1x512x64xf32> to vector<512x64xf32>
    %cst = arith.constant dense<0.000000e+00> : vector<32x64xf32>
    %3 = tpu.matmul %0, %2, %cst {dimension_numbers = #tpu.dot_dimension_numbers<[1], [0], [0], [1], [0, 0, 1, 1], [], []>} : vector<32x512xf32>, vector<512x64xf32>, vector<32x64xf32> -> vector<32x64xf32>
    %cst_4 = arith.constant 0.000000e+00 : f32
    %4 = vector.broadcast %cst_4 : f32 to vector<32x64xf32>
    %5 = arith.cmpf ogt, %3, %4 : vector<32x64xf32>
    %cst_5 = arith.constant 0.000000e+00 : f32
    %6 = vector.broadcast %cst_5 : f32 to vector<32x64xf32>
    %7 = arith.cmpf olt, %3, %6 : vector<32x64xf32>
    %cst_6 = arith.constant -1.000000e+00 : f32
    %cst_7 = arith.constant 0.000000e+00 : f32
    %8 = vector.broadcast %cst_6 : f32 to vector<32x64xf32>
    %9 = vector.broadcast %cst_7 : f32 to vector<32x64xf32>
    %10 = arith.select %7, %8, %9 : vector<32x64xi1>, vector<32x64xf32>
    %cst_8 = arith.constant 1.000000e+00 : f32
    %11 = vector.broadcast %cst_8 : f32 to vector<32x64xf32>
    %12 = arith.select %5, %11, %10 : vector<32x64xi1>, vector<32x64xf32>
    %c0_9 = arith.constant 0 : index
    %c0_10 = arith.constant 0 : index
    %c0_11 = arith.constant 0 : index
    %13 = vector.load %arg4[%c0_9, %c0_10, %c0_11] : memref<1x32x64xf32, #tpu.memory_space<vmem>>, vector<1x32x64xf32>
    %14 = vector.shape_cast %13 : vector<1x32x64xf32> to vector<32x64xf32>
    %15 = vector.shape_cast %12 : vector<32x64xf32> to vector<1x32x64xf32>
    tpu.vector_store %arg4[%c0_9, %c0_10, %c0_11], %15 {strides = array<i32>} : memref<1x32x64xf32, #tpu.memory_space<vmem>>, vector<1x32x64xf32>,
    return
  }
  func.func @transform_0(%arg0: i32, %arg1: i32) -> (i32, i32) {
    %c0_i32 = arith.constant 0 : i32
    %c0_i32_0 = arith.constant 0 : i32
    %c0_i32_1 = arith.constant 0 : i32
    return %c0_i32, %c0_i32_0 : i32, i32
  }
  func.func @transform_1(%arg0: i32, %arg1: i32) -> (i32, i32, i32) {
    %c0_i32 = arith.constant 0 : i32
    %c0_i32_0 = arith.constant 0 : i32
    return %arg0, %c0_i32, %arg1 : i32, i32, i32
  }
  func.func @transform_2(%arg0: i32, %arg1: i32) -> (i32, i32, i32) {
    %c0_i32 = arith.constant 0 : i32
    %c0_i32_0 = arith.constant 0 : i32
    return %arg0, %c0_i32, %arg1 : i32, i32, i32
  }
}

</mosaic_0001>

<bundles_post_ra>
// kernel: tpu_custom_call.1
= control target key start
LH: loop header
LB: loop body
LE: loop exit
PB: predicated region body
PF: predicated region fallthrough
CT: control target
= control target key end

     0   :  { %7 = vsyncpa [#allocation3], 0  ;;  %s876_s0 = inlined_call_operand.vmem [shape: f32[32,512], index: 0, kind: input, shape index: {}]   ;;  %s877_s1 = inlined_call_operand.vmem [shape: f32[2,512,64], index: 1, kind: input, shape index: {}]   ;;  %s878_s2 = inlined_call_operand.hbm [shape: f32[2,32,64], index: 2, kind: output, shape index: {}]  }
   0x1   :  { %9 = vsyncpa [#allocation3 + $0x1], 0  ;;  %s650_s9 = smov 0   ;;  %s652_s10 = smov 0  }
   0x2   :  { %s654_s11 = smov 0   ;;  %s656_s12 = smov 0  }
   0x3   :  { %s658_s13 = smov 0   ;;  %s660_s14 = smov 0  }
   0x4 LB: > { %s479_s15 = sadd.s32 4294967295, %s630_s14   ;;  %s480_s16 = sadd.s32 4294967294, %s630_s14   ;;  %s630_s14 = sphi %s660_s14, %s15_s14   ;;  %s626_s13 = sphi %s658_s13, %s885_s13   ;;  %s622_s12 = sphi %s656_s12, %s884_s12   ;;  %s618_s11 = sphi %s654_s11, %s883_s11   ;;  %s614_s10 = sphi %s652_s10, %s882_s10   ;;  %s610_s9 = sphi %s650_s9, %s881_s9  }
   0x5   : > { %s27_s17 = sadd.s32 1, %s626_s13  ;;  %s85_s18 = sadd.s32 1, %s618_s11 }
   0x6   : > { %p29_p0 = scmp.ge.s32.totalorder %s27_s17, 2  ;;  %p95_p1 = scmp.ne.s32.totalorder %s618_s11, %s614_s10 }
   0x7   : > { %p96_p2 = scmp.eq.s32.totalorder %s479_s15, 1  ;;  %p101_p3 = scmp.ne.s32.totalorder %s614_s10, %s610_s9 }
   0x8   : > { %s887_s17 = smov (%p29_p0, %s27_s17), 0  ;;  %p102_p5 = scmp.eq.s32.totalorder %s480_s16, 1 }
   0x9   : > { %p690_p4 = por %p96_p2, %p95_p1  ;;  %s80_s20 = ssub.s32 %s626_s13, %s887_s17 }
   0xa   : > { %p483_p6 = scmp.ge.s32.totalorder %s630_s14, 1  ;;  %p83_p7 = scmp.eq.s32.totalorder %s80_s20, 0 }
   0xb   : > { %p697_p8 = por %p102_p5, %p101_p3  ;;  %p134_p9 = scmp.lt.s32.totalorder %s630_s14, 3 }
   0xc   : > { %s703_s22 = scalar_select %p83_p7, %s618_s11, %s85_s18  }
   0xd   : > { %p135_p10 = pnand %p483_p6, %p134_p9 }
   0xe   : > { %p159_p11 = scmp.lt.s32.totalorder (!%p135_p10), %s622_s12, 1  ;;  %s572_s15 = scalar_lea.hbm (!%p135_p10), %s878_s2, 64 }
   0xf   : > { %138 = sbr.rel (%p135_p10) target bundleno = 224 (0xe0), region = 28 }
  0x14   : > { %s160_s23 = scalar_select %p159_p11, %s622_s12, 1  ;;  %v169_v62 = vld [vmem:[%s876_s0 + $0x10] sm:$0xff]  ;;  %v170_v63 = vld [vmem:[%s876_s0 + $0x18] sm:$0xff]  ;;  %vm379_vm2 = vcmask 523264  }
  0x16   : > { %s492_s24 = sshll.u32 %s160_s23, 9 }
  0x17   : > { %s710_s27 = scalar_lea.vmem %s877_s1, %s492_s24  ;;  %s156_s24 = sand.u32 1, %s614_s10  }
  0x18   : > { %v230_v0 = vld [vmem:[%s710_s27 + $0x178] sm:$0xff]  ;;  %v229_v1 = vld [vmem:[%s710_s27 + $0x170] sm:$0xff]  ;;  %v228_v5 = vld [vmem:[%s710_s27 + $0x168] sm:$0xff]  ;;  %s484_s25 = sshll.u32 %s156_s24, 5 }
  0x19   : > { %v246_v2 = vld [vmem:[%s710_s27 + $0x1f8] sm:$0xff]  ;;  %305 = vmatpush.msra.mxu2 %v230_v0  ;;  %v245_v6 = vld [vmem:[%s710_s27 + $0x1f0] sm:$0xff]  ;;  %v244_v9 = vld [vmem:[%s710_s27 + $0x1e8] sm:$0xff]  ;;  %s827_s26 = scalar_lea.vmem [#allocation2], %s484_s25 }
  0x1a   : > { %334 = vmatpush.msra.mxu3 %v246_v2  ;;  %v198_v3 = vld [vmem:[%s710_s27 + $0x78] sm:$0xff]  ;;  %v197_v7 = vld [vmem:[%s710_s27 + $0x70] sm:$0xff]  ;;  %v196_v10 = vld [vmem:[%s710_s27 + $0x68] sm:$0xff]  ;;  %s398_s3 = sshll.u32 %s827_s26, 4  ;;  %s399_s3 = int_to_ptr.vmem [resolvable:$true] %s398_s3 }
  0x1b   : > { %v214_v4 = vld [vmem:[%s710_s27 + $0xf8] sm:$0xff]  ;;  %247 = vmatpush.msra.mxu0 %v198_v3  ;;  %v213_v8 = vld [vmem:[%s710_s27 + $0xf0] sm:$0xff]  ;;  %306 = vmatpush.msra.mxu2 %v229_v1  ;;  %v227_v11 = vld [vmem:[%s710_s27 + $0x160] sm:$0xff] }
  0x1c   : > { %276 = vmatpush.msra.mxu1 %v214_v4  ;;  %335 = vmatpush.msra.mxu3 %v245_v6  ;;  %v212_v12 = vld [vmem:[%s710_s27 + $0xe8] sm:$0xff]  ;;  %v243_v13 = vld [vmem:[%s710_s27 + $0x1e0] sm:$0xff]  ;;  %v226_v16 = vld [vmem:[%s710_s27 + $0x158] sm:$0xff] }
  0x1d   : > { %248 = vmatpush.msra.mxu0 %v197_v7  ;;  %307 = vmatpush.msra.mxu2 %v228_v5  ;;  %v195_v14 = vld [vmem:[%s710_s27 + $0x60] sm:$0xff]  ;;  %v242_v17 = vld [vmem:[%s710_s27 + $0x1d8] sm:$0xff]  ;;  %v225_v20 = vld [vmem:[%s710_s27 + $0x150] sm:$0xff] }
  0x1e   : > { %277 = vmatpush.msra.mxu1 %v213_v8  ;;  %336 = vmatpush.msra.mxu3 %v244_v9  ;;  %v211_v15 = vld [vmem:[%s710_s27 + $0xe0] sm:$0xff]  ;;  %v194_v18 = vld [vmem:[%s710_s27 + $0x58] sm:$0xff]  ;;  %v241_v21 = vld [vmem:[%s710_s27 + $0x1d0] sm:$0xff] }
  0x1f   : > { %249 = vmatpush.msra.mxu0 %v196_v10  ;;  %308 = vmatpush.msra.mxu2 %v227_v11  ;;  %v210_v19 = vld [vmem:[%s710_s27 + $0xd8] sm:$0xff]  ;;  %v193_v22 = vld [vmem:[%s710_s27 + $0x50] sm:$0xff]  ;;  %v224_v24 = vld [vmem:[%s710_s27 + $0x148] sm:$0xff] }
  0x20   : > { %278 = vmatpush.msra.mxu1 %v212_v12  ;;  %337 = vmatpush.msra.mxu3 %v243_v13  ;;  %v209_v23 = vld [vmem:[%s710_s27 + $0xd0] sm:$0xff]  ;;  %v240_v25 = vld [vmem:[%s710_s27 + $0x1c8] sm:$0xff]  ;;  %v223_v28 = vld [vmem:[%s710_s27 + $0x140] sm:$0xff] }
  0x21   : > { %250 = vmatpush.msra.mxu0 %v195_v14  ;;  %309 = vmatpush.msra.mxu2 %v226_v16  ;;  %v192_v26 = vld [vmem:[%s710_s27 + $0x48] sm:$0xff]  ;;  %v239_v29 = vld [vmem:[%s710_s27 + $0x1c0] sm:$0xff]  ;;  %v222_v32 = vld [vmem:[%s710_s27 + $0x138] sm:$0xff] }
  0x22   : > { %279 = vmatpush.msra.mxu1 %v211_v15  ;;  %338 = vmatpush.msra.mxu3 %v242_v17  ;;  %v208_v27 = vld [vmem:[%s710_s27 + $0xc8] sm:$0xff]  ;;  %v191_v30 = vld [vmem:[%s710_s27 + $0x40] sm:$0xff]  ;;  %v238_v33 = vld [vmem:[%s710_s27 + $0x1b8] sm:$0xff] }
  0x23   : > { %251 = vmatpush.msra.mxu0 %v194_v18  ;;  %310 = vmatpush.msra.mxu2 %v225_v20  ;;  %v207_v31 = vld [vmem:[%s710_s27 + $0xc0] sm:$0xff]  ;;  %v190_v34 = vld [vmem:[%s710_s27 + $0x38] sm:$0xff]  ;;  %v221_v36 = vld [vmem:[%s710_s27 + $0x130] sm:$0xff] }
  0x24   : > { %280 = vmatpush.msra.mxu1 %v210_v19  ;;  %339 = vmatpush.msra.mxu3 %v241_v21  ;;  %v206_v35 = vld [vmem:[%s710_s27 + $0xb8] sm:$0xff]  ;;  %v237_v37 = vld [vmem:[%s710_s27 + $0x1b0] sm:$0xff]  ;;  %v220_v40 = vld [vmem:[%s710_s27 + $0x128] sm:$0xff] }
  0x25   : > { %252 = vmatpush.msra.mxu0 %v193_v22  ;;  %311 = vmatpush.msra.mxu2 %v224_v24  ;;  %v189_v38 = vld [vmem:[%s710_s27 + $0x30] sm:$0xff]  ;;  %v236_v41 = vld [vmem:[%s710_s27 + $0x1a8] sm:$0xff]  ;;  %v219_v44 = vld [vmem:[%s710_s27 + $0x120] sm:$0xff] }
  0x26   : > { %281 = vmatpush.msra.mxu1 %v209_v23  ;;  %340 = vmatpush.msra.mxu3 %v240_v25  ;;  %v205_v39 = vld [vmem:[%s710_s27 + $0xb0] sm:$0xff]  ;;  %v188_v42 = vld [vmem:[%s710_s27 + $0x28] sm:$0xff]  ;;  %v235_v45 = vld [vmem:[%s710_s27 + $0x1a0] sm:$0xff] }
  0x27   : > { %253 = vmatpush.msra.mxu0 %v192_v26  ;;  %312 = vmatpush.msra.mxu2 %v223_v28  ;;  %v204_v43 = vld [vmem:[%s710_s27 + $0xa8] sm:$0xff]  ;;  %v187_v46 = vld [vmem:[%s710_s27 + $0x20] sm:$0xff]  ;;  %v218_v48 = vld [vmem:[%s710_s27 + $0x118] sm:$0xff]  ;;  %v632_v26 = vmov 0.0  }
  0x28   : > { %282 = vmatpush.msra.mxu1 %v208_v27  ;;  %341 = vmatpush.msra.mxu3 %v239_v29  ;;  %v203_v47 = vld [vmem:[%s710_s27 + $0xa0] sm:$0xff]  ;;  %v234_v49 = vld [vmem:[%s710_s27 + $0x198] sm:$0xff]  ;;  %v217_v52 = vld [vmem:[%s710_s27 + $0x110] sm:$0xff] }
  0x29   : > { %254 = vmatpush.msra.mxu0 %v191_v30  ;;  %313 = vmatpush.msra.mxu2 %v222_v32  ;;  %v186_v50 = vld [vmem:[%s710_s27 + $0x18] sm:$0xff]  ;;  %v233_v53 = vld [vmem:[%s710_s27 + $0x190] sm:$0xff]  ;;  %v216_v56 = vld [vmem:[%s710_s27 + $0x108] sm:$0xff] }
  0x2a   : > { %283 = vmatpush.msra.mxu1 %v207_v31  ;;  %342 = vmatpush.msra.mxu3 %v238_v33  ;;  %v202_v51 = vld [vmem:[%s710_s27 + $0x98] sm:$0xff]  ;;  %v185_v54 = vld [vmem:[%s710_s27 + $0x10] sm:$0xff]  ;;  %v232_v57 = vld [vmem:[%s710_s27 + $0x188] sm:$0xff] }
  0x2b   : > { %255 = vmatpush.msra.mxu0 %v190_v34  ;;  %314 = vmatpush.msra.mxu2 %v221_v36  ;;  %v201_v55 = vld [vmem:[%s710_s27 + $0x90] sm:$0xff]  ;;  %v184_v58 = vld [vmem:[%s710_s27 + $0x8] sm:$0xff]  ;;  %v215_v60 = vld [vmem:[%s710_s27 + $0x100] sm:$0xff] }
  0x2c   : > { %284 = vmatpush.msra.mxu1 %v206_v35  ;;  %343 = vmatpush.msra.mxu3 %v237_v37  ;;  %v200_v59 = vld [vmem:[%s710_s27 + $0x88] sm:$0xff]  ;;  %v231_v61 = vld [vmem:[%s710_s27 + $0x180] sm:$0xff]  ;;  %v173_v4 = vld [vmem:[%s876_s0 + $0x30] sm:$0xff] }
  0x2d   : > { %256 = vmatpush.msra.mxu0 %v189_v38  ;;  %315 = vmatpush.msra.mxu2 %v220_v40  ;;  %v183_v0 = vld [vmem:[%s710_s27] sm:$0xff]  ;;  %v168_v3 = vld [vmem:[%s876_s0 + $0x8] sm:$0xff]  ;;  %v174_v5 = vld [vmem:[%s876_s0 + $0x38] sm:$0xff] }
  0x2e   : > { %285 = vmatpush.msra.mxu1 %v205_v39  ;;  %344 = vmatpush.msra.mxu3 %v236_v41  ;;  %v199_v1 = vld [vmem:[%s710_s27 + $0x80] sm:$0xff]  ;;  %v172_v7 = vld [vmem:[%s876_s0 + $0x28] sm:$0xff]  ;;  %v177_v8 = vld [vmem:[%s876_s0 + $0x50] sm:$0xff]  ;;  %s493_s27 = sshll.u32 %s622_s12, 5  ;;  %s385_s12 = scalar_lea.sflag [#allocation3], %s156_s24 }
  0x2f   : > { %257 = vmatpush.msra.mxu0 %v188_v42  ;;  %316 = vmatpush.msra.mxu2 %v219_v44  ;;  %v167_v2 = vld [vmem:[%s876_s0] sm:$0xff]  ;;  %v178_v9 = vld [vmem:[%s876_s0 + $0x58] sm:$0xff]  ;;  %v176_v11 = vld [vmem:[%s876_s0 + $0x48] sm:$0xff]  ;;  %s397_s30 = scalar_lea.hbm %s878_s2, %s493_s27 }
  0x30   : > { %286 = vmatpush.msra.mxu1 %v204_v43  ;;  %345 = vmatpush.msra.mxu3 %v235_v45  ;;  %v171_v6 = vld [vmem:[%s876_s0 + $0x20] sm:$0xff]  ;;  %v181_v12 = vld [vmem:[%s876_s0 + $0x70] sm:$0xff]  ;;  %v182_v13 = vld [vmem:[%s876_s0 + $0x78] sm:$0xff]  ;;  %s400_s4 = sshll.u32 %s397_s30, 4  ;;  %s401_s4 = int_to_ptr.hbm [resolvable:$true] %s400_s4 }
  0x31   : > { %258 = vmatpush.msra.mxu0 %v187_v46  ;;  %317 = vmatpush.msra.mxu2 %v218_v48  ;;  %v175_v10 = vld [vmem:[%s876_s0 + $0x40] sm:$0xff]  ;;  %v180_v15 = vld [vmem:[%s876_s0 + $0x68] sm:$0xff]  ;;  %s566_s5 = sshra.s32 %s401_s4, 4  ;;  %s567_s5 = int_to_ptr.hbm [resolvable:$true] %s566_s5 }
  0x32   : > { %287 = vmatpush.msra.mxu1 %v203_v47  ;;  %346 = vmatpush.msra.mxu3 %v234_v49  ;;  %v179_v14 = vld [vmem:[%s876_s0 + $0x60] sm:$0xff]  ;;  %s568_s6 = scalar_lea.hbm %s567_s5, 32  ;;  %p573_p1 = scmp.lt.s32.totalorder %s567_s5, %s878_s2 }
  0x33   : > { %259 = vmatpush.msra.mxu0 %v186_v50  ;;  %318 = vmatpush.msra.mxu2 %v217_v52  ;;  %p569_p12 = scmp.ne.s32.totalorder %s567_s5, %s568_s6  ;;  %p574_p2 = scmp.lt.s32.totalorder %s572_s15, %s568_s6 }
  0x34   : > { %288 = vmatpush.msra.mxu1 %v202_v51  ;;  %347 = vmatpush.msra.mxu3 %v233_v53 }
  0x35   : > { %260 = vmatpush.msra.mxu0 %v185_v54  ;;  %319 = vmatpush.msra.mxu2 %v216_v56  ;;  %p570_p13 = pnand %p569_p12, %p690_p4  ;;  %p575_p3 = por %p574_p2, %p573_p1 }
  0x36   : > { %289 = vmatpush.msra.mxu1 %v201_v55  ;;  %348 = vmatpush.msra.mxu3 %v232_v57 }
  0x37   : > { %261 = vmatpush.msra.mxu0 %v184_v58  ;;  %320 = vmatpush.msra.mxu2 %v215_v60  ;;  %p571_p0 = pneg %p570_p13 }
  0x38   : > { %290 = vmatpush.msra.mxu1 %v200_v59  ;;  %349 = vmatpush.msra.mxu3 %v231_v61 }
  0x39   : > { %321 = vmatmul.f32.vlgmr.msra.gmra.mxu2 %v169_v62  ;;  %350 = vmatmul.f32.vlgmr.msra.gmra.mxu3 %v170_v63  ;;  %p576_p5 = pnand %p575_p3, %p571_p0 }
  0x3a   : > { %262 = vmatpush.msra.mxu0 %v183_v0  ;;  %291 = vmatpush.msra.mxu1 %v199_v1 }
  0x3b   : > { %263 = vmatmul.f32.vlgmr.msra.gmra.mxu0 %v167_v2  ;;  %292 = vmatmul.f32.vlgmr.msra.gmra.mxu1 %v168_v3 }
  0x41   : > { %324 = vmatmul.f32.gmra.mxu2 %v173_v4  ;;  %353 = vmatmul.f32.gmra.mxu3 %v174_v5 }
  0x43   : > { %266 = vmatmul.f32.gmra.mxu0 %v171_v6  ;;  %295 = vmatmul.f32.gmra.mxu1 %v172_v7 }
  0x49   : > { %327 = vmatmul.f32.gmra.mxu2 %v177_v8  ;;  %356 = vmatmul.f32.gmra.mxu3 %v178_v9 }
  0x4b   : > { %269 = vmatmul.f32.gmra.mxu0 %v175_v10  ;;  %298 = vmatmul.f32.gmra.mxu1 %v176_v11 }
  0x51   : > { %330 = vmatmul.f32.gmra.mxu2 %v181_v12  ;;  %359 = vmatmul.f32.gmra.mxu3 %v182_v13 }
  0x53   : > { %272 = vmatmul.f32.gmra.mxu0 %v179_v14  ;;  %301 = vmatmul.f32.gmra.mxu1 %v180_v15 }
  0xb8   : > { %v264_v16 = vpop.f32.mrf.mxu0  ;;  %v293_v17 = vpop.f32.mrf.mxu1 }
  0xb9   : > { %v294_v18 = vadd.f32 %v293_v17, %v264_v16 }
  0xbc   : > { %v322_v19 = vpop.f32.mrf.mxu2  ;;  %v351_v20 = vpop.f32.mrf.mxu3 }
  0xbd   : > { %v323_v21 = vadd.f32 %v322_v19, %v294_v18 }
  0xbf   : > { %v352_v22 = vadd.f32 %v351_v20, %v323_v21 }
  0xc0   : > { %v267_v23 = vpop.f32.mrf.mxu0  ;;  %v296_v24 = vpop.f32.mrf.mxu1 }
  0xc1   : > { %vm363_vm0 = vcmp.gt.f32.partialorder %v352_v22, 0.0  ;;  %vm367_vm1 = vcmp.lt.f32.partialorder %v352_v22, 0.0  ;;  %v297_v25 = vadd.f32 %v296_v24, %v267_v23 }
  0xc2   : > { %v371_v27 = vsel %vm367_vm1, -1.0, %v632_v26 }
  0xc3   : > { %v375_v28 = vsel %vm363_vm0, 1.0, %v371_v27 }
  0xc4   : > { %380 = vst.msk [vmem:[%s827_s26] sm:$0xff] %vm379_vm2, %v375_v28  ;;  %v325_v29 = vpop.f32.mrf.mxu2  ;;  %v354_v30 = vpop.f32.mrf.mxu3 }
  0xc5   : > { %v326_v31 = vadd.f32 %v325_v29, %v297_v25 }
  0xc7   : > { %v355_v32 = vadd.f32 %v354_v30, %v326_v31 }
  0xc8   : > { %v270_v33 = vpop.f32.mrf.mxu0  ;;  %v299_v34 = vpop.f32.mrf.mxu1 }
  0xc9   : > { %vm364_vm3 = vcmp.gt.f32.partialorder %v355_v32, 0.0  ;;  %vm368_vm4 = vcmp.lt.f32.partialorder %v355_v32, 0.0  ;;  %v300_v35 = vadd.f32 %v299_v34, %v270_v33 }
  0xca   : > { %v372_v36 = vsel %vm368_vm4, -1.0, %v632_v26 }
  0xcb   : > { %v376_v37 = vsel %vm364_vm3, 1.0, %v372_v36 }
  0xcc   : > { %381 = vst.msk [vmem:[%s827_s26 + $0x8] sm:$0xff] %vm379_vm2, %v376_v37  ;;  %v328_v38 = vpop.f32.mrf.mxu2  ;;  %v357_v39 = vpop.f32.mrf.mxu3 }
  0xcd   : > { %v329_v40 = vadd.f32 %v328_v38, %v300_v35 }
  0xcf   : > { %v358_v41 = vadd.f32 %v357_v39, %v329_v40 }
  0xd0   : > { %v273_v42 = vpop.f32.mrf.mxu0  ;;  %v302_v43 = vpop.f32.mrf.mxu1 }
  0xd1   : > { %vm365_vm5 = vcmp.gt.f32.partialorder %v358_v41, 0.0  ;;  %vm369_vm6 = vcmp.lt.f32.partialorder %v358_v41, 0.0  ;;  %v303_v44 = vadd.f32 %v302_v43, %v273_v42 }
  0xd2   : > { %v373_v45 = vsel %vm369_vm6, -1.0, %v632_v26 }
  0xd3   : > { %v377_v46 = vsel %vm365_vm5, 1.0, %v373_v45 }
  0xd4   : > { %382 = vst.msk [vmem:[%s827_s26 + $0x10] sm:$0xff] %vm379_vm2, %v377_v46  ;;  %v331_v47 = vpop.f32.mrf.mxu2  ;;  %v360_v48 = vpop.f32.mrf.mxu3 }
  0xd5   : > { %v332_v49 = vadd.f32 %v331_v47, %v303_v44 }
  0xd7   : > { %v361_v50 = vadd.f32 %v360_v48, %v332_v49 }
  0xd9   : > { %vm366_vm7 = vcmp.gt.f32.partialorder %v361_v50, 0.0  ;;  %vm370_vm8 = vcmp.lt.f32.partialorder %v361_v50, 0.0 }
  0xda   : > { %v374_v51 = vsel %vm370_vm8, -1.0, %v632_v26 }
  0xdb   : > { %v378_v52 = vsel %vm366_vm7, 1.0, %v374_v51 }
  0xdc   : > { %383 = vst.msk [vmem:[%s827_s26 + $0x18] sm:$0xff] %vm379_vm2, %v378_v52 }
  0xdd   : > { %579 = shalt.err (!%p576_p5)
}
  0xde   : > { %s633_s20 = smov 128   ;;  %s634_s23 = smov 8  }
  0xdf   : > { %494 = dma.vmem_to_hbm [thread:$0]  (%p690_p4), %s399_s3, 512, %s401_s4, %s385_s12, %s633_s20, %s633_s20, %s634_s23  }
  0xe0 PF: > { %p500_p6 = scmp.ge.s32.totalorder %s630_s14, 2  ;;  %s415_s24 = sand.u32 1, %s610_s9  }
  0xe1   : > { %s416_s25 = scalar_lea.sflag [#allocation3], %s415_s24 }
  0xe2   : > { %p497_p7 = pnand %p500_p6, %p697_p8 }
  0xe4   : > { %p498_p9 = pneg %p497_p7 }
  0xe6   : > { %605 = dma.done.wait (%p498_p9), %s416_s25, 512  }
  0xe7   : > { %607 = vsyncadd (%p498_p9), %s416_s25, 4294966784  ;;  %s15_s14 = sadd.s32 1, %s630_s14   ;;  %s881_s9 = smov %s614_s10 }
  0xe8   : > { %p12_p10 = scmp.ge.s32.totalorder %s15_s14, 4   ;;  %s882_s10 = smov %s618_s11 }
  0xe9   : > { %s883_s11 = smov %s703_s22  ;;  %s884_s12 = smov %s626_s13 }
  0xea   : > { %s885_s13 = smov %s887_s17  ;;  %14 = sbr.rel (!%p12_p10) target bundleno = 4 (0x4), region = 63 }
  0xef   :  { %422 = vsyncpa [#allocation3], 1 }
  0xf0   :  { %424 = vsyncpa [#allocation3 + $0x1], 1 }

</bundles_post_ra>
